<compile_context>
chip_gen: v5e
topology: v5e:2x2
jax: 0.10.0
libtpu: 0.0.40
codegen_flags: <defaults>
</compile_context>

<pallas_src>
import jax
import jax.numpy as jnp
import numpy as np
from jax.experimental import pallas as pl
from jax.experimental.pallas import tpu as pltpu


def _dropout_mul_kernel(x_ref, m_ref, o_ref):
    """x_ref/o_ref: (TR, TL);  m_ref: (TR, 1) if tied else (TR, TL)."""
    x = x_ref[...].astype(jnp.float32)
    o_ref[...] = (x * m_ref[...]).astype(o_ref.dtype)


def _tile(dim, align, max_tile):
    """Largest multiple of `align` that divides `dim` and is <= max_tile.

    Falls back to the full extent when `dim` is not `align`-aligned (full-extent
    block dims are always legal for Mosaic).
    """
    if dim % align != 0:
        return dim
    t = max(align, min(dim, (max_tile // align) * align))
    while dim % t != 0:
        t -= align
    return t


def dropout_nd(x, key, *, p=0.5, tie=True, transposed=True, training=True):
    """JAX/Pallas equivalent of DropoutNd.forward.

    x: (batch, dim, lengths...) if transposed=True, else (batch, lengths..., dim).
    key: jax PRNG key used to draw the dropout mask.
    """
    if not (0.0 <= p < 1.0):
        raise ValueError(f"dropout probability has to be in [0, 1), got {p}")
    if not training:
        return x

    if not transposed:
        x = jnp.moveaxis(x, -1, 1)  # b ... d -> b d ...

    orig_shape = x.shape
    B, D = x.shape[0], x.shape[1]
    L = int(np.prod(x.shape[2:])) if x.ndim > 2 else 1
    BD = B * D
    x2 = x.reshape(BD, L)

    keep = 1.0 - float(p)
    scale = 1.0 / keep
    if tie:
        # One Bernoulli(keep) draw per (batch, channel), tied across lengths.
        keep_mask = jax.random.bernoulli(key, keep, shape=(BD, 1))
    else:
        # TODO(synk): untied masks are precomputed host-side (extra HBM read);
        # an in-kernel pltpu.prng_seed/prng_random_bits variant would remove
        # that bandwidth on real TPUs.
        keep_mask = jax.random.bernoulli(key, keep, shape=(BD, L))
    mask = keep_mask.astype(jnp.float32) * jnp.float32(scale)  # 0 or 1/(1-p)

    # Tile selection: lane-dense along L (128-aligned, up to 4096 lanes), then
    # fill rows (8-aligned) up to ~1 MiB per x block -> <= ~6 MiB live VMEM
    # even for untied f32 with double buffering.
    itemsize = x2.dtype.itemsize
    TL = _tile(L, 128, 4096)
    row_budget = max(8, (1 << 20) // max(1, TL * itemsize))
    TR = _tile(BD, 8, row_budget)
    grid = (BD // TR, L // TL)

    x_spec = pl.BlockSpec((TR, TL), lambda r, l: (r, l))
    if tie:
        m_spec = pl.BlockSpec((TR, 1), lambda r, l: (r, 0))
    else:
        m_spec = pl.BlockSpec((TR, TL), lambda r, l: (r, l))

    out2 = pl.pallas_call(
        _dropout_mul_kernel,
        out_shape=jax.ShapeDtypeStruct((BD, L), x2.dtype),
        grid=grid,
        in_specs=[x_spec, m_spec],
        out_specs=pl.BlockSpec((TR, TL), lambda r, l: (r, l)),
        compiler_params=pltpu.CompilerParams(
            dimension_semantics=("parallel", "parallel")),
    )(x2, mask)

    out = out2.reshape(orig_shape)
    if not transposed:
        out = jnp.moveaxis(out, 1, -1)  # b d ... -> b ... d
    return out


if __name__ == "__main__":
    root = jax.random.PRNGKey(0)
    k_data, k_drop, k_drop2, k_drop3, k_drop4 = jax.random.split(root, 5)

    # (batch, channels, spatial, spatial): flattened L = 256 (lane-dense).
    B, D, H, W = 2, 4, 16, 16
    x = jax.random.normal(k_data, (B, D, H, W), dtype=jnp.float32)
    p = 0.5
    scale = 1.0 / (1.0 - p)
    x_np = np.asarray(x)

    # --- Tied (Dropout2d-style) path ---
    y = dropout_nd(x, k_drop, p=p, tie=True, transposed=True, training=True)
    y = jax.block_until_ready(y)
    y_np = np.asarray(y)
    is_zero = np.isclose(y_np, 0.0)
    is_scaled = np.isclose(y_np, x_np * scale, rtol=1e-5, atol=1e-6)
    assert np.all(is_zero | is_scaled), "output elements must be 0 or x/(1-p)"
    yf = y_np.reshape(B, D, -1)
    xf = x_np.reshape(B, D, -1)
    row_kept = np.isclose(yf, xf * scale, rtol=1e-5, atol=1e-6).all(axis=-1)
    row_dropped = np.isclose(yf, 0.0).all(axis=-1)
    assert np.all(row_kept | row_dropped), "mask must be tied across length dims"

    # --- Untied path ---
    y_un = dropout_nd(x, k_drop2, p=p, tie=False, transposed=True, training=True)
    y_un = jax.block_until_ready(y_un)
    yu = np.asarray(y_un)
    assert np.all(np.isclose(yu, 0.0) |
                  np.isclose(yu, x_np * scale, rtol=1e-5, atol=1e-6))

    # --- transposed=False path (channels-last input) ---
    x_cl = jnp.moveaxis(x, 1, -1)  # (B, H, W, D)
    y_cl = dropout_nd(x_cl, k_drop3, p=p, tie=True, transposed=False, training=True)
    y_cl = jax.block_until_ready(y_cl)
    ycl = np.asarray(y_cl)
    xcl = np.asarray(x_cl)
    assert ycl.shape == xcl.shape
    assert np.all(np.isclose(ycl, 0.0) |
                  np.isclose(ycl, xcl * scale, rtol=1e-5, atol=1e-6))

    # --- bf16 input: scale applied in f32, cast once ---
    x_bf = x.astype(jnp.bfloat16)
    y_bf = dropout_nd(x_bf, k_drop4, p=p, tie=True, transposed=True, training=True)
    y_bf = jax.block_until_ready(y_bf)
    ybf = np.asarray(y_bf.astype(jnp.float32))
    xbf = np.asarray(x_bf.astype(jnp.float32))
    assert ybf.shape == xbf.shape
    assert np.all(np.isclose(ybf, 0.0) |
                  np.isclose(ybf, xbf * scale, rtol=1e-2, atol=1e-3))

    # --- Eval mode is identity ---
    y_eval = dropout_nd(x, k_drop, p=p, training=False)
    assert np.allclose(np.asarray(y_eval), x_np)

    print("KERNEL_OK")
</pallas_src>

<mosaic_0001>
module attributes {stable_mosaic.version = 11 : i64} {
  func.func @_dropout_mul_kernel(%arg0: i32, %arg1: i32, %arg2: memref<8x256xf32, #tpu.memory_space<vmem>>, %arg3: memref<8x1xf32, #tpu.memory_space<vmem>>, %arg4: memref<8x256xf32, #tpu.memory_space<vmem>>) attributes {dimension_semantics = [#tpu.dimension_semantics<parallel>, #tpu.dimension_semantics<parallel>], iteration_bounds = array<i64: 1, 1>, scalar_prefetch = 0 : i64, scratch_operands = 0 : i64, tpu.core_type = #tpu.core_type<tc>, window_params = [{transform_indices = @transform_0, window_bounds = array<i64: 8, 256>}, {transform_indices = @transform_1, window_bounds = array<i64: 8, 1>}, {transform_indices = @transform_2, window_bounds = array<i64: 8, 256>}]} {
    %c0 = arith.constant 0 : index
    %c0_0 = arith.constant 0 : index
    %0 = vector.load %arg2[%c0, %c0_0] : memref<8x256xf32, #tpu.memory_space<vmem>>, vector<8x256xf32>
    %c0_1 = arith.constant 0 : index
    %c0_2 = arith.constant 0 : index
    %1 = vector.load %arg3[%c0_1, %c0_2] : memref<8x1xf32, #tpu.memory_space<vmem>>, vector<8x1xf32>
    %2 = vector.broadcast %1 : vector<8x1xf32> to vector<8x256xf32>
    %3 = arith.mulf %0, %2 : vector<8x256xf32>
    %c0_3 = arith.constant 0 : index
    %c0_4 = arith.constant 0 : index
    %4 = vector.load %arg4[%c0_3, %c0_4] : memref<8x256xf32, #tpu.memory_space<vmem>>, vector<8x256xf32>
    tpu.vector_store %arg4[%c0_3, %c0_4], %3 {strides = array<i32>} : memref<8x256xf32, #tpu.memory_space<vmem>>, vector<8x256xf32>,
    return
  }
  func.func @transform_0(%arg0: i32, %arg1: i32) -> (i32, i32) {
    %c0_i32 = arith.constant 0 : i32
    return %arg0, %arg1 : i32, i32
  }
  func.func @transform_1(%arg0: i32, %arg1: i32) -> (i32, i32) {
    %c0_i32 = arith.constant 0 : i32
    %c0_i32_0 = arith.constant 0 : i32
    return %arg0, %c0_i32 : i32, i32
  }
  func.func @transform_2(%arg0: i32, %arg1: i32) -> (i32, i32) {
    %c0_i32 = arith.constant 0 : i32
    return %arg0, %arg1 : i32, i32
  }
}

</mosaic_0001>

<bundles_post_ra>
// kernel: tpu_custom_call.1
= control target key start
LH: loop header
LB: loop body
LE: loop exit
PB: predicated region body
PF: predicated region fallthrough
CT: control target
= control target key end

     0   :  { %7 = vsyncpa [#allocation3], 0  ;;  %s138_s0 = inlined_call_operand.hbm [shape: f32[8,256], index: 0, kind: input, shape index: {}]   ;;  %s139_s1 = inlined_call_operand.vmem [shape: f32[8,1], index: 1, kind: input, shape index: {}]   ;;  %s140_s2 = inlined_call_operand.hbm [shape: f32[8,256], index: 2, kind: output, shape index: {}]  }
   0x1   :  { %8 = vsyncpa [#allocation4], 0  ;;  %s14_s11 = sshll.u32 %s138_s0, 4  ;;  %s111_s12 = smov [#allocation2]   ;;  %s15_s11 = int_to_ptr.hbm [resolvable:$true] %s14_s11 }
   0x2   :  { %s16_s13 = sshll.u32 %s111_s12, 4  ;;  %s17_s13 = int_to_ptr.vmem [resolvable:$true] %s16_s13 }
   0x3   :  { %19 = dma.hbm_to_vmem [thread:$0]  %s15_s11, 256, %s17_s13, [#allocation3]  }
   0x4   :  { %107 = dma.done.wait [#allocation3], 256  }
   0x5   :  { %108 = vsyncadd [#allocation3], 4294967040  ;;  %v112_v0 = vmov 0   ;;  %v28_v1 = vld [vmem:[%s139_s1] sm:$0xff]  ;;  %v27_v3 = vld [vmem:[#allocation2 + $0x8] sm:$0xff]  ;;  %s113_s16 = smov [#allocation5]  }
   0x6   :  { %58 = vset.pattern.permute.xlu0 %v112_v0  ;;  %v26_v2 = vld [vmem:[#allocation2] sm:$0xff]  ;;  %s43_s17 = sshll.u32 %s113_s16, 4  ;;  %s45_s19 = sshll.u32 %s140_s2, 4  ;;  %s44_s17 = int_to_ptr.vmem [resolvable:$true] %s43_s17  ;;  %s46_s19 = int_to_ptr.hbm [resolvable:$true] %s45_s19 }
   0x7   :  { %31 = vperm.xlu0 %58, %v28_v1  }
  0x79   :  { %v32_v4 = vpop.permute.xlu0 %31 }
  0x7a   :  { %v34_v5 = vmul.f32 %v32_v4, %v26_v2  ;;  %v35_v6 = vmul.f32 %v32_v4, %v27_v3 }
  0x7c   :  { %36 = vst [vmem:[#allocation5] sm:$0xff] %v34_v5 }
  0x7d   :  { %37 = vst [vmem:[#allocation5 + $0x8] sm:$0xff] %v35_v6 }
  0x7e   :  { %48 = dma.vmem_to_hbm [thread:$0]  %s44_s17, 256, %s46_s19, [#allocation4]  }
  0x7f   :  { %109 = dma.done.wait [#allocation4], 256  }
  0x80   :  { %110 = vsyncadd [#allocation4], 4294967040 }
  0x81   :  { %53 = vsyncpa [#allocation3], 1 }
  0x82   :  { %54 = vsyncpa [#allocation4], 1 }

</bundles_post_ra>
